<compile_context>
chip_gen: v7x
topology: tpu7x:2x2x1
jax: 0.10.0
libtpu: 0.0.40
codegen_flags: <defaults>
</compile_context>

<pallas_src>
import functools
import math

import jax
import jax.numpy as jnp
from jax import lax
from jax.experimental import pallas as pl
from jax.experimental.pallas import tpu as pltpu

_LANE = 128


def _round_up(x: int, m: int) -> int:
    return ((x + m - 1) // m) * m


def _vmem_limit_bytes() -> int:
    """Per-generation VMEM budget: ~100 MiB on v5e/v6e (128 MiB physical),
    ~48 MiB on v7x (64 MiB physical).  Conservative fallback if the query
    is unavailable."""
    try:
        cap = int(pltpu.get_tpu_info().vmem_capacity_bytes)
    except Exception:
        cap = 64 * 1024 * 1024
    return max(32 * 1024 * 1024, min(cap - 16 * 1024 * 1024, 100 * 1024 * 1024))


def _plan_seq_tiles(seq_len: int, tq_cap: int, tk_cap: int):
    """Returns (tq, tk, padded_seq).  Prefers large tiles (>=128) that divide
    S; short sequences use a single full tile; long sequences with no clean
    divisor are padded (padded keys get -inf scores in-kernel)."""
    def pick(cap):
        if seq_len <= cap:
            return seq_len
        for t in (512, 384, 256, 128):
            if t <= cap and seq_len % t == 0:
                return t
        return None

    tq, tk = pick(tq_cap), pick(tk_cap)
    if tq is not None and tk is not None:
        return tq, tk, seq_len
    if seq_len <= 512:                      # short odd sequence: one tile
        return seq_len, seq_len, seq_len
    t = min(256, tq_cap, tk_cap)            # long odd sequence: pad + mask.
    return t, t, _round_up(seq_len, t)      # tq == tk -> no fully-masked tile


def prepare_self_attention_params(w_qkv, b_qkv, w_out, b_out, *,
                                  compute_dtype=None):
    """One-time weight prep (do at model init, NOT per call):
      * split the fused QKV weight and transpose everything to (in, out),
      * zero-pad the projection output dim to a multiple of 128 so every
        hot-loop tile is lane dense,
      * cast MXU operands to the compute dtype (pass jnp.bfloat16 for f32
        checkpoints on v5e/v6e/v7x to use the bf16 MXU path)."""
    d = w_out.shape[0]
    dp = _round_up(d, _LANE)
    pad = dp - d
    cdt = jnp.dtype(compute_dtype) if compute_dtype is not None \
        else jnp.dtype(w_qkv.dtype)

    def t_pad(w):                                   # (out, in) -> (in, out_p)
        return jnp.pad(w.T, ((0, 0), (0, pad))).astype(cdt)

    def b_pad(bias):
        return jnp.pad(bias, ((0, pad),)).reshape(1, dp).astype(jnp.float32)

    wq, wk, wv = (w_qkv[i * d:(i + 1) * d] for i in range(3))
    bq, bk, bv = (b_qkv[i * d:(i + 1) * d] for i in range(3))

    return dict(
        hidden_dim=d,
        dp=dp,
        compute_dtype=cdt,
        w_q=t_pad(wq),                                    # (d, dp)
        b_q=b_pad(bq),                                    # (1, dp)  f32
        w_kv=jnp.stack([t_pad(wk), t_pad(wv)], axis=0),   # (2, d, dp)
        b_kv=jnp.stack([b_pad(bk), b_pad(bv)], axis=0),   # (2, 1, dp) f32
        w_o=jnp.pad(w_out.T, ((0, pad), (0, 0))).astype(cdt),  # (dp, d)
        b_o=b_out.reshape(1, d).astype(jnp.float32),      # (1, d)   f32
    )


# ---------------------------------------------------------------------------
# Pass 1: K/V projection (hoisted out of the attention loop).
# ---------------------------------------------------------------------------
def _kv_projection_kernel(x_ref, w_kv_ref, b_kv_ref, k_ref, v_ref,
                          *, compute_dtype):
    dn = (((1,), (0,)), ((), ()))                     # x @ W   (in,out layout)
    xt = x_ref[0].astype(compute_dtype)               # (ts, d)
    k = lax.dot_general(xt, w_kv_ref[0], dn, preferred_element_type=jnp.float32)
    k_ref[0] = (k + b_kv_ref[0]).astype(k_ref.dtype)
    v = lax.dot_general(xt, w_kv_ref[1], dn, preferred_element_type=jnp.float32)
    v_ref[0] = (v + b_kv_ref[1]).astype(v_ref.dtype)


# ---------------------------------------------------------------------------
# Pass 2: fused Q projection + online-softmax attention + output projection.
# ---------------------------------------------------------------------------
def _flash_attention_kernel(xq_ref, k_ref, v_ref, w_q_ref, b_q_ref,
                            w_o_ref, b_o_ref, o_ref,
                            q_sc, m_sc, l_sc, acc_sc,
                            *, hidden_dim, compute_dtype, kv_len, tk,
                            mask_padded_keys):
    ki = pl.program_id(2)
    nk = pl.num_programs(2)
    f32 = jnp.float32
    cdt = compute_dtype
    dn = (((1,), (0,)), ((), ()))     # a @ b
    dn_t = (((1,), (1,)), ((), ()))   # a @ b.T with no materialized transpose

    @pl.when(ki == 0)
    def _init():
        # Project & scale Q once per (b, q-tile); cached across the kv axis.
        xq = xq_ref[0].astype(cdt)                                # (tq, d)
        q = lax.dot_general(xq, w_q_ref[...], dn, preferred_element_type=f32)
        q = q + b_q_ref[...]
        q_sc[...] = (q * (1.0 / math.sqrt(hidden_dim))).astype(cdt)
        m_sc[...] = jnp.full_like(m_sc, -jnp.inf)
        l_sc[...] = jnp.zeros_like(l_sc)
        acc_sc[...] = jnp.zeros_like(acc_sc)

    k = k_ref[0]                                                   # (tk, dp)
    v = v_ref[0]                                                   # (tk, dp)
    s = lax.dot_general(q_sc[...], k, dn_t, preferred_element_type=f32)
    if mask_padded_keys:
        kv_idx = ki * tk + lax.broadcasted_iota(jnp.int32, s.shape, 1)
        s = jnp.where(kv_idx < kv_len, s, -jnp.inf)
    # TODO(synk): attention_mask (module default None) would be applied here.

    # Online softmax update — all elementwise math in f32 (v5e-safe).
    m_prev = m_sc[...]
    m_new = jnp.maximum(m_prev, jnp.max(s, axis=-1, keepdims=True))
    alpha = jnp.exp(m_prev - m_new)
    p = jnp.exp(s - m_new)
    # TODO(synk): nn.Dropout on the attention weights is identity at inference.
    l_sc[...] = alpha * l_sc[...] + jnp.sum(p, axis=-1, keepdims=True)
    acc_sc[...] = alpha * acc_sc[...] + lax.dot_general(
        p.astype(cdt), v, dn, preferred_element_type=f32)
    m_sc[...] = m_new

    @pl.when(ki == nk - 1)
    def _finalize():
        if o_ref.dtype == jnp.float32:
            inv_l = 1.0 / l_sc[...]            # exact: runs once per q-tile
        else:
            inv_l = pl.reciprocal(l_sc[...], approx=True)   # EUP, ~free
        attn = (acc_sc[...] * inv_l).astype(cdt)             # (tq, dp)
        out = lax.dot_general(attn, w_o_ref[...], dn,
                              preferred_element_type=f32)    # (tq, d)
        o_ref[0] = (out + b_o_ref[...]).astype(o_ref.dtype)
        # TODO(synk): torch forward's print(attention_weight) is omitted.


def self_attention_pallas(x, params):
    """x: (B, S, D); params: prepare_self_attention_params(...) output."""
    b, s, d = x.shape
    assert d == params["hidden_dim"]
    dp = params["dp"]
    cdt = params["compute_dtype"]

    vmem_limit = _vmem_limit_bytes()
    tq_cap = 512 if vmem_limit >= 96 * 1024 * 1024 else 256   # v5e/v6e vs v7x
    tk_cap = 256
    tq, tk, sp = _plan_seq_tiles(s, tq_cap, tk_cap)
    # v7x megacore: make sure both TensorCores get at least one (b, qi) step.
    if b * (sp // tq) < 2 and tq >= 16 and sp % (tq // 2) == 0:
        tq //= 2

    if sp != s:
        # Rare long-odd-S path only: pad the sequence; padded keys are masked
        # with -inf in-kernel and padded query rows are sliced off below.
        x = jnp.pad(x, ((0, 0), (0, sp - s), (0, 0)))

    # ---- pass 1: K/V projection, hoisted out of the attention loop ---------
    ts = max(tq, tk)
    k_proj, v_proj = pl.pallas_call(
        functools.partial(_kv_projection_kernel, compute_dtype=cdt),
        out_shape=(jax.ShapeDtypeStruct((b, sp, dp), cdt),
                   jax.ShapeDtypeStruct((b, sp, dp), cdt)),
        grid_spec=pltpu.PrefetchScalarGridSpec(
            num_scalar_prefetch=0,
            grid=(b, sp // ts),
            in_specs=[
                pl.BlockSpec((1, ts, d), lambda bi, si: (bi, si, 0)),
                pl.BlockSpec((2, d, dp), lambda bi, si: (0, 0, 0)),
                pl.BlockSpec((2, 1, dp), lambda bi, si: (0, 0, 0)),
            ],
            out_specs=[
                pl.BlockSpec((1, ts, dp), lambda bi, si: (bi, si, 0)),
                pl.BlockSpec((1, ts, dp), lambda bi, si: (bi, si, 0)),
            ],
        ),
        compiler_params=pltpu.CompilerParams(
            dimension_semantics=("parallel", "parallel"),
            vmem_limit_bytes=vmem_limit,
        ),
    )(x, params["w_kv"], params["b_kv"])

    # ---- pass 2: fused Q proj + flash attention + output projection --------
    kernel = functools.partial(
        _flash_attention_kernel,
        hidden_dim=d, compute_dtype=cdt, kv_len=s, tk=tk,
        mask_padded_keys=(sp != s))

    out = pl.pallas_call(
        kernel,
        out_shape=jax.ShapeDtypeStruct((b, sp, d), x.dtype),
        grid_spec=pltpu.PrefetchScalarGridSpec(
            num_scalar_prefetch=0,
            grid=(b, sp // tq, sp // tk),
            in_specs=[
                pl.BlockSpec((1, tq, d), lambda bi, qi, ki: (bi, qi, 0)),
                pl.BlockSpec((1, tk, dp), lambda bi, qi, ki: (bi, ki, 0)),
                pl.BlockSpec((1, tk, dp), lambda bi, qi, ki: (bi, ki, 0)),
                # Constant-index weights/biases: DMA'd once, resident in VMEM.
                # TODO(synk): for dp >= ~2048 bf16 on v7x (64 MiB VMEM), tile
                # the weight contraction dim instead of keeping it resident.
                pl.BlockSpec((d, dp), lambda bi, qi, ki: (0, 0)),
                pl.BlockSpec((1, dp), lambda bi, qi, ki: (0, 0)),
                pl.BlockSpec((dp, d), lambda bi, qi, ki: (0, 0)),
                pl.BlockSpec((1, d), lambda bi, qi, ki: (0, 0)),
            ],
            out_specs=pl.BlockSpec((1, tq, d), lambda bi, qi, ki: (bi, qi, 0)),
            scratch_shapes=[
                pltpu.VMEM((tq, dp), cdt),           # cached (scaled) Q tile
                pltpu.VMEM((tq, 1), jnp.float32),    # running row max
                pltpu.VMEM((tq, 1), jnp.float32),    # running denominator
                pltpu.VMEM((tq, dp), jnp.float32),   # un-normalized out acc
            ],
        ),
        compiler_params=pltpu.CompilerParams(
            dimension_semantics=("parallel", "parallel", "arbitrary"),
            vmem_limit_bytes=vmem_limit,
        ),
    )(x, k_proj, v_proj, params["w_q"], params["b_q"],
      params["w_o"], params["b_o"])

    return out[:, :s] if sp != s else out


def self_attention_ref(x, w_qkv, b_qkv, w_out, b_out):
    """Pure-JAX reference matching the PyTorch forward (dropout = identity)."""
    d = x.shape[-1]
    hp = jax.lax.Precision.HIGHEST
    qkv = jnp.einsum("bsd,od->bso", x, w_qkv, precision=hp) + b_qkv
    q, k, v = jnp.split(qkv, 3, axis=-1)
    s = jnp.einsum("bqd,bkd->bqk", q, k, precision=hp) / math.sqrt(d)
    w = jax.nn.softmax(s, axis=-1)
    o = jnp.einsum("bqk,bkd->bqd", w, v, precision=hp)
    return jnp.einsum("bqd,od->bqo", o, w_out, precision=hp) + b_out


if __name__ == "__main__":
    B, S, D = 2, 8, 32  # batch, seq_len, hidden_dim (small test shape)

    key = jax.random.PRNGKey(0)
    kx, kw1, kb1, kw2, kb2 = jax.random.split(key, 5)

    # PyTorch nn.Linear-style uniform(-1/sqrt(fan_in), 1/sqrt(fan_in)) init.
    bound = 1.0 / math.sqrt(D)
    x = jax.random.normal(kx, (B, S, D), dtype=jnp.float32)
    w_qkv = jax.random.uniform(kw1, (3 * D, D), minval=-bound, maxval=bound,
                               dtype=jnp.float32)
    b_qkv = jax.random.uniform(kb1, (3 * D,), minval=-bound, maxval=bound,
                               dtype=jnp.float32)
    w_out = jax.random.uniform(kw2, (D, D), minval=-bound, maxval=bound,
                               dtype=jnp.float32)
    b_out = jax.random.uniform(kb2, (D,), minval=-bound, maxval=bound,
                               dtype=jnp.float32)

    # Weight prep done once (at "init"), not per forward call.
    params = prepare_self_attention_params(w_qkv, b_qkv, w_out, b_out)

    out = jax.block_until_ready(self_attention_pallas(x, params))
    ref = self_attention_ref(x, w_qkv, b_qkv, w_out, b_out)

    if not jnp.allclose(out, ref, atol=2e-3, rtol=2e-3):
        max_err = float(jnp.max(jnp.abs(out - ref)))
        raise AssertionError(
            f"Pallas self-attention does not match reference (max err {max_err})")

    print("KERNEL_OK")
</pallas_src>

<mosaic_0001>
module attributes {stable_mosaic.version = 11 : i64} {
  func.func @_kv_projection_kernel(%arg0: i32, %arg1: i32, %arg2: memref<1x8x32xf32, #tpu.memory_space<vmem>>, %arg3: memref<2x32x128xf32, #tpu.memory_space<vmem>>, %arg4: memref<2x1x128xf32, #tpu.memory_space<vmem>>, %arg5: memref<1x8x128xf32, #tpu.memory_space<vmem>>, %arg6: memref<1x8x128xf32, #tpu.memory_space<vmem>>) attributes {dimension_semantics = [#tpu.dimension_semantics<parallel>, #tpu.dimension_semantics<parallel>], iteration_bounds = array<i64: 2, 1>, scalar_prefetch = 0 : i64, scratch_operands = 0 : i64, tpu.core_type = #tpu.core_type<tc>, window_params = [{transform_indices = @transform_0, window_bounds = array<i64: 1, 8, 32>}, {pipeline_mode = #tpu.pipeline_mode<synchronous>, transform_indices = @transform_1, window_bounds = array<i64: 2, 32, 128>}, {pipeline_mode = #tpu.pipeline_mode<synchronous>, transform_indices = @transform_2, window_bounds = array<i64: 2, 1, 128>}, {transform_indices = @transform_3, window_bounds = array<i64: 1, 8, 128>}, {transform_indices = @transform_4, window_bounds = array<i64: 1, 8, 128>}]} {
    %c0 = arith.constant 0 : index
    %c0_0 = arith.constant 0 : index
    %c0_1 = arith.constant 0 : index
    %0 = vector.load %arg2[%c0, %c0_0, %c0_1] : memref<1x8x32xf32, #tpu.memory_space<vmem>>, vector<1x8x32xf32>
    %1 = vector.shape_cast %0 : vector<1x8x32xf32> to vector<8x32xf32>
    %c0_2 = arith.constant 0 : index
    %c0_3 = arith.constant 0 : index
    %c0_4 = arith.constant 0 : index
    %2 = vector.load %arg3[%c0_2, %c0_3, %c0_4] : memref<2x32x128xf32, #tpu.memory_space<vmem>>, vector<1x32x128xf32>
    %3 = vector.shape_cast %2 : vector<1x32x128xf32> to vector<32x128xf32>
    %cst = arith.constant dense<0.000000e+00> : vector<8x128xf32>
    %4 = tpu.matmul %1, %3, %cst {dimension_numbers = #tpu.dot_dimension_numbers<[1], [0], [0], [1], [0, 0, 1, 1], [], []>} : vector<8x32xf32>, vector<32x128xf32>, vector<8x128xf32> -> vector<8x128xf32>
    %c0_5 = arith.constant 0 : index
    %c0_6 = arith.constant 0 : index
    %c0_7 = arith.constant 0 : index
    %5 = vector.load %arg4[%c0_5, %c0_6, %c0_7] : memref<2x1x128xf32, #tpu.memory_space<vmem>>, vector<1x1x128xf32>
    %6 = vector.shape_cast %5 : vector<1x1x128xf32> to vector<1x128xf32>
    %7 = vector.broadcast %6 : vector<1x128xf32> to vector<8x128xf32>
    %8 = arith.addf %4, %7 : vector<8x128xf32>
    %c0_8 = arith.constant 0 : index
    %c0_9 = arith.constant 0 : index
    %c0_10 = arith.constant 0 : index
    %9 = vector.load %arg5[%c0_8, %c0_9, %c0_10] : memref<1x8x128xf32, #tpu.memory_space<vmem>>, vector<1x8x128xf32>
    %10 = vector.shape_cast %9 : vector<1x8x128xf32> to vector<8x128xf32>
    %11 = vector.shape_cast %8 : vector<8x128xf32> to vector<1x8x128xf32>
    tpu.vector_store %arg5[%c0_8, %c0_9, %c0_10], %11 {strides = array<i32>} : memref<1x8x128xf32, #tpu.memory_space<vmem>>, vector<1x8x128xf32>,
    %c1 = arith.constant 1 : index
    %c0_11 = arith.constant 0 : index
    %c0_12 = arith.constant 0 : index
    %12 = vector.load %arg3[%c1, %c0_11, %c0_12] : memref<2x32x128xf32, #tpu.memory_space<vmem>>, vector<1x32x128xf32>
    %13 = vector.shape_cast %12 : vector<1x32x128xf32> to vector<32x128xf32>
    %cst_13 = arith.constant dense<0.000000e+00> : vector<8x128xf32>
    %14 = tpu.matmul %1, %13, %cst_13 {dimension_numbers = #tpu.dot_dimension_numbers<[1], [0], [0], [1], [0, 0, 1, 1], [], []>} : vector<8x32xf32>, vector<32x128xf32>, vector<8x128xf32> -> vector<8x128xf32>
    %c1_14 = arith.constant 1 : index
    %c0_15 = arith.constant 0 : index
    %c0_16 = arith.constant 0 : index
    %15 = vector.load %arg4[%c1_14, %c0_15, %c0_16] : memref<2x1x128xf32, #tpu.memory_space<vmem>>, vector<1x1x128xf32>
    %16 = vector.shape_cast %15 : vector<1x1x128xf32> to vector<1x128xf32>
    %17 = vector.broadcast %16 : vector<1x128xf32> to vector<8x128xf32>
    %18 = arith.addf %14, %17 : vector<8x128xf32>
    %c0_17 = arith.constant 0 : index
    %c0_18 = arith.constant 0 : index
    %c0_19 = arith.constant 0 : index
    %19 = vector.load %arg6[%c0_17, %c0_18, %c0_19] : memref<1x8x128xf32, #tpu.memory_space<vmem>>, vector<1x8x128xf32>
    %20 = vector.shape_cast %19 : vector<1x8x128xf32> to vector<8x128xf32>
    %21 = vector.shape_cast %18 : vector<8x128xf32> to vector<1x8x128xf32>
    tpu.vector_store %arg6[%c0_17, %c0_18, %c0_19], %21 {strides = array<i32>} : memref<1x8x128xf32, #tpu.memory_space<vmem>>, vector<1x8x128xf32>,
    return
  }
  func.func @transform_0(%arg0: i32, %arg1: i32) -> (i32, i32, i32) {
    %c0_i32 = arith.constant 0 : i32
    %c0_i32_0 = arith.constant 0 : i32
    return %arg0, %arg1, %c0_i32 : i32, i32, i32
  }
  func.func @transform_1(%arg0: i32, %arg1: i32) -> (i32, i32, i32) {
    %c0_i32 = arith.constant 0 : i32
    %c0_i32_0 = arith.constant 0 : i32
    %c0_i32_1 = arith.constant 0 : i32
    %c0_i32_2 = arith.constant 0 : i32
    return %c0_i32, %c0_i32_0, %c0_i32_1 : i32, i32, i32
  }
  func.func @transform_2(%arg0: i32, %arg1: i32) -> (i32, i32, i32) {
    %c0_i32 = arith.constant 0 : i32
    %c0_i32_0 = arith.constant 0 : i32
    %c0_i32_1 = arith.constant 0 : i32
    %c0_i32_2 = arith.constant 0 : i32
    return %c0_i32, %c0_i32_0, %c0_i32_1 : i32, i32, i32
  }
  func.func @transform_3(%arg0: i32, %arg1: i32) -> (i32, i32, i32) {
    %c0_i32 = arith.constant 0 : i32
    %c0_i32_0 = arith.constant 0 : i32
    return %arg0, %arg1, %c0_i32 : i32, i32, i32
  }
  func.func @transform_4(%arg0: i32, %arg1: i32) -> (i32, i32, i32) {
    %c0_i32 = arith.constant 0 : i32
    %c0_i32_0 = arith.constant 0 : i32
    return %arg0, %arg1, %c0_i32 : i32, i32, i32
  }
}

</mosaic_0001>

<bundles_post_ra>
// kernel: tpu_custom_call.1
= control target key start
LH: loop header
LB: loop body
LE: loop exit
PB: predicated region body
PF: predicated region fallthrough
CT: control target
= control target key end

     0   :  { %10 = vsyncpa [#allocation3], 0  ;;  %s1202_s0 = inlined_call_operand.hbm [shape: f32[2,8,32], index: 0, kind: input, shape index: {}]   ;;  %s1203_s1 = inlined_call_operand.hbm [shape: f32[2,32,128], index: 1, kind: input, shape index: {}]   ;;  %s1204_s2 = inlined_call_operand.vmem [shape: f32[2,1,128], index: 2, kind: input, shape index: {}]   ;;  %s1205_s3 = inlined_call_operand.hbm [shape: f32[2,8,128], index: 3, kind: output, shape index: {0}]   ;;  %s1206_s4 = inlined_call_operand.hbm [shape: f32[2,8,128], index: 4, kind: output, shape index: {1}]  }
   0x1   :  { %12 = vsyncpa [#allocation3 + $0x1], 0 }
   0x2   :  { %13 = vsyncpa [#allocation6], 0 }
   0x3   :  { %14 = vsyncpa [#allocation4], 0 }
   0x4   :  { %16 = vsyncpa [#allocation4 + $0x1], 0 }
   0x5   :  { %17 = vsyncpa [#allocation9], 0 }
   0x6   :  { %19 = vsyncpa [#allocation9 + $0x1], 0  ;;  %s948_s15 = smov 0   ;;  %s950_s16 = smov 0  }
   0x7   :  { %s952_s17 = smov 0   ;;  %s954_s18 = smov 0  }
   0x8   :  { %s956_s19 = smov 0   ;;  %s958_s20 = smov 0  }
   0x9 LB: > { %s586_s21 = sadd.s32 4294967295, %s912_s20   ;;  %s587_s22 = sadd.s32 4294967294, %s912_s20   ;;  %s912_s20 = sphi %s958_s20, %s25_s20   ;;  %s908_s19 = sphi %s956_s19, %s1230_s19   ;;  %s904_s18 = sphi %s954_s18, %s1229_s18   ;;  %s900_s17 = sphi %s952_s17, %s1228_s17   ;;  %s896_s16 = sphi %s950_s16, %s1227_s16   ;;  %s892_s15 = sphi %s948_s15, %s1226_s15  }
   0xa   : > { %p59_p0 = scmp.ne.s32.totalorder %s896_s16, %s892_s15  ;;  %p982_p1 = scmp.eq.s32.totalorder %s586_s21, 0 }
   0xb   : > { %p986_p2 = scmp.eq.s32.totalorder %s586_s21, 1  ;;  %p133_p3 = scmp.eq.s32.totalorder %s587_s22, 1 }
   0xc   : > { %s1211_s23 = scalar_select %p982_p1, 1, 0 }
   0xd   : > { %s1212_s24 = scalar_select %p986_p2, 1, 0 }
   0xe   : > { %p992_p4 = por %p982_p1, %p59_p0  ;;  %p588_p5 = scmp.ge.s32.totalorder %s912_s20, 1 }
   0xf   : > { %p997_p6 = por %p133_p3, %p59_p0  ;;  %p168_p7 = scmp.lt.s32.totalorder %s912_s20, 3 }
  0x10   : > { %s1213_s25 = scalar_select %p992_p4, 1, 0 }
  0x11   : > { %s1214_s26 = scalar_select %p997_p6, 1, 0 }
  0x12   : > { %p1002_p8 = pnand %p588_p5, %p168_p7  ;;  %s914_s28 = smov [#allocation5]  }
  0x13   : > { %s180_s29 = sshll.u32 %s914_s28, 4  ;;  %s37_s5 = sadd.s32 1, %s908_s19  ;;  %s181_s29 = int_to_ptr.vmem [resolvable:$true] %s180_s29 }
  0x14   : > { %s1215_s27 = scalar_select %p1002_p8, 1, 0 }
  0x15   : > { %p663_p9 = pneg %p1002_p8  ;;  %s736_s8 = scalar_lea.hbm %s1203_s1, 1024 }
  0x16   : > { %p737_p12 = scmp.ne.s32.totalorder %s1203_s1, %s736_s8  ;;  %p743_p5 = scmp.lt.u32.totalorder %s736_s8, %s1203_s1 }
  0x17   : > { %p1011_p11 = pnand %p663_p9, %p982_p1 }
  0x19   : > { %p738_p13 = pneg %p1011_p11 }
  0x1b   : > { %p739_p0 = pnand %p738_p13, %p737_p12 }
  0x1d   : > { %p740_p3 = pneg %p739_p0 }
  0x1f   : > { %p745_p7 = pnand %p743_p5, %p740_p3 }
  0x21   : > { %748 = shalt.err (!%p745_p7)
}
  0x22   : > { %s749_s13 = scalar_lea.vmem %s181_s29, 1024  ;;  %p757_p1 = scmp.lt.s32.totalorder %s181_s29, %s181_s29 }
  0x23   : > { %p750_p9 = scmp.ne.s32.totalorder %s181_s29, %s749_s13  ;;  %p758_p4 = scmp.lt.s32.totalorder %s749_s13, %s749_s13 }
  0x25   : > { %p752_p10 = pnand %p750_p9, %p738_p13  ;;  %p759_p8 = por %p758_p4, %p757_p1 }
  0x27   : > { %p753_p6 = pneg %p752_p10 }
  0x29   : > { %p760_p2 = pnand %p759_p8, %p753_p6 }
  0x2b   : > { %763 = shalt.err (!%p760_p2)
}
  0x2c   : > { %s915_s14 = smov 128   ;;  %s916_s21 = smov 8  }
  0x2d   : > { %666 = dma.hbm_to_vmem [thread:$0]  (!%p1011_p11), %s1203_s1, 1024, %s181_s29, [#allocation6], %s915_s14, %s915_s14, %s916_s21  }
  0x2e   : > { %p39_p1 = scmp.ge.s32.totalorder %s37_s5, 2  ;;  %s46_s6 = sadd.s32 1, %s900_s17 }
  0x2f   : > { %p53_p2 = scmp.ne.s32.totalorder %s900_s17, %s896_s16  ;;  %p54_p4 = scmp.eq.s32.totalorder %s912_s20, 0 }
  0x30   : > { %s1232_s5 = smov (%p39_p1, %s37_s5), 0  ;;  %p1218_p8 = scmp.ne.s32.totalorder %s1212_s24, 0 }
  0x31   : > { %p1038_p6 = por %p54_p4, %p53_p2  ;;  %s41_s30 = ssub.s32 %s908_s19, %s1232_s5 }
  0x32   : > { %p1044_p10 = por %p1218_p8, %p53_p2  ;;  %p679_p12 = scmp.lt.s32.totalorder %s912_s20, 2 }
  0x33   : > { %p44_p11 = scmp.eq.s32.totalorder %s41_s30, 0  ;;  %s197_s29 = sand.u32 1, %s900_s17  }
  0x34   : > { %s591_s9 = sshll.u32 %s197_s29, 3  ;;  %s592_s11 = sshll.u32 %s908_s19, 7 }
  0x35   : > { %s1053_s10 = scalar_select %p44_p11, %s900_s17, %s46_s6  }
  0x36   : > { %s1059_s14 = scalar_lea.hbm %s1202_s0, %s592_s11  ;;  %s201_s24 = scalar_lea.vmem [#allocation2], %s591_s9 }
  0x37   : > { %s209_s21 = sshll.u32 %s201_s24, 4  ;;  %p1065_p13 = pnand %p679_p12, %p1038_p6  ;;  %s1061_s21 = int_to_ptr.vmem [resolvable:$true] %s209_s21 }
  0x38   : > { %s198_s28 = scalar_lea.sflag [#allocation3], %s197_s29  ;;  %s764_s6 = scalar_lea.hbm %s1059_s14, 128 }
  0x39   : > { %p765_p0 = scmp.ne.s32.totalorder %s1059_s14, %s764_s6  ;;  %p766_p3 = pneg %p1065_p13 }
  0x3a   : > { %s769_s11 = scalar_lea.hbm %s1202_s0, 256  ;;  %p770_p9 = scmp.lt.u32.totalorder %s1059_s14, %s1202_s0 }
  0x3b   : > { %p767_p5 = pnand %p766_p3, %p765_p0  ;;  %p771_p1 = scmp.lt.u32.totalorder %s769_s11, %s764_s6 }
  0x3c   : > { %p773_p4 = scmp.lt.u32.totalorder %s764_s6, %s1059_s14 }
  0x3d   : > { %p768_p7 = pneg %p767_p5  ;;  %p772_p2 = por %p771_p1, %p770_p9 }
  0x3f   : > { %p774_p6 = por %p773_p4, %p772_p2 }
  0x41   : > { %p775_p8 = pnand %p774_p6, %p768_p7 }
  0x43   : > { %778 = shalt.err (!%p775_p8)
}
  0x44   : > { %s779_s29 = scalar_lea.vmem %s1061_s21, 128  ;;  %s917_s13 = smov [#allocation2]  }
  0x45   : > { %p780_p12 = scmp.ne.s32.totalorder %s1061_s21, %s779_s29  ;;  %s784_s24 = sshll.u32 %s917_s13, 4  ;;  %s785_s24 = int_to_ptr.vmem [resolvable:$false] %s784_s24 }
  0x46   : > { %s786_s30 = scalar_lea.vmem %s785_s24, 256  ;;  %p787_p5 = scmp.lt.s32.totalorder %s1061_s21, %s785_s24 }
  0x47   : > { %p782_p11 = pnand %p780_p12, %p766_p3  ;;  %p788_p9 = scmp.lt.s32.totalorder %s786_s30, %s779_s29 }
  0x49   : > { %p783_p0 = pneg %p782_p11  ;;  %p789_p1 = por %p788_p9, %p787_p5 }
  0x4b   : > { %p790_p2 = pnand %p789_p1, %p783_p0 }
  0x4d   : > { %793 = shalt.err (!%p790_p2)
}
  0x4e   : > { %670 = dma.hbm_to_vmem [thread:$0]  (!%p1065_p13), %s1059_s14, 128, %s1061_s21, %s198_s28  }
  0x4f   : > { %p1221_p7 = scmp.ne.s32.totalorder %s1215_s27, 0 }
  0x50   : > { %s1097_s6 = sand.u32 (!%p1221_p7), 1, %s896_s16   ;;  %p1222_p3 = scmp.ne.s32.totalorder (!%p1221_p7), %s1213_s25, 0 }
  0x51   : > { %218 = sbr.rel (%p1221_p7) target bundleno = 355 (0x163), region = 32  ;;  %s1100_s9 = sshll.u32 (!%p1221_p7), %s1097_s6, 3 }
  0x52   : > { %s221_s11 = scalar_lea.sflag (!%p1221_p7), [#allocation3], %s1097_s6  ;;  %s224_s7 = scalar_lea.vmem (!%p1221_p7), [#allocation2], %s1100_s9 }
  0x58   : > { %875 = dma.done.wait (%p1222_p3), %s221_s11, 128  }
  0x59   : > { %877 = vsyncadd (%p1222_p3), %s221_s11, 4294967168  ;;  %p1223_p13 = scmp.ne.s32.totalorder %s1211_s23, 0 }
  0x5b   : > { %879 = dma.done.wait (%p1223_p13), [#allocation6], 1024  }
  0x5c   : > { %881 = vsyncadd (%p1223_p13), [#allocation6], 4294966272  ;;  %v918_v0 = vmov 0.0|0.0   ;;  %vm919_vm0 = vmmov 0   ;;  %v920_v1 = vmov 0.0   ;;  %v259_v2 = vld [vmem:[#allocation5] sm:$0xff] }
  0x5d   : > { %641 = vmatprep.subr.bf16.mxu0 %v918_v0  ;;  %647 = vmatprep.subr.bf16.mxu1 %v918_v0  ;;  %v260_v3 = vld [vmem:[#allocation5 + $0x8] sm:$0xff]  ;;  %v346_v4 = vld [vmem:[#allocation5 + $0x20] sm:$0xff]  ;;  %v261_v7 = vld [vmem:[#allocation5 + $0x10] sm:$0xff]  ;;  %vm270_vm1 = vcmask 261120   ;;  %s605_s23 = sshll.u32 %s904_s18, 7  ;;  %s250_s14 = scalar_lea.vmem [#allocation7], %s1100_s9 }
  0x5e   : > { %627 = vmatprep.mubr.msk.f32.mxu0 %vm919_vm0, %v920_v1  ;;  %638 = vmatprep.mubr.msk.f32.mxu1 %vm919_vm0, %v920_v1  ;;  %v642_v5 = vpack.c.bf16 %v260_v3, %v259_v2  ;;  %v347_v6 = vld [vmem:[#allocation5 + $0x28] sm:$0xff]  ;;  %v262_v8 = vld [vmem:[#allocation5 + $0x18] sm:$0xff]  ;;  %v348_v10 = vld [vmem:[#allocation5 + $0x30] sm:$0xff]  ;;  %s449_s21 = sshll.u32 %s250_s14, 4  ;;  %s257_s12 = scalar_lea.vmem [#allocation8], %s1100_s9  ;;  %s1126_s21 = int_to_ptr.vmem [resolvable:$true] %s449_s21 }
  0x5f   : > { %v648_v9 = vpack.c.bf16 %v347_v6, %v346_v4  ;;  %v349_v11 = vld [vmem:[#allocation5 + $0x38] sm:$0xff]  ;;  %v645_v12 = vpack.c.bf16 %v262_v8, %v261_v7  ;;  %v598_v15 = vld [vmem:[%s1204_s2] ss:$0 sm:$0xff]  ;;  %v601_v16 = vld [vmem:[%s1204_s2 + $0x1] ss:$0 sm:$0xff]  ;;  %s463_s29 = sshll.u32 %s257_s12, 4  ;;  %s1124_s30 = scalar_lea.hbm %s1205_s3, %s605_s23  ;;  %s1133_s29 = int_to_ptr.vmem [resolvable:$true] %s463_s29 }
  0x60   : > { %643 = vmatpush3.bf16.msra.mxu0 %v642_v5  ;;  %v651_v13 = vpack.c.bf16 %v349_v11, %v348_v10  ;;  %v258_v14 = vld [vmem:[%s224_s7] sm:$0xff]  ;;  %s1131_s11 = scalar_lea.hbm %s1206_s4, %s605_s23  ;;  %s430_s7 = scalar_lea.sflag [#allocation4], %s1097_s6 }
  0x61   : > { %649 = vmatpush3.bf16.msra.mxu1 %v648_v9  ;;  %644 = vmatprep.subr.bf16.mxu0 %v918_v0  ;;  %s794_s25 = scalar_lea.vmem %s1126_s21, 128  ;;  %s921_s27 = smov [#allocation7]  }
  0x62   : > { %650 = vmatprep.subr.bf16.mxu1 %v918_v0  ;;  %p795_p4 = scmp.ne.s32.totalorder %s1126_s21, %s794_s25  ;;  %s798_s22 = sshll.u32 %s921_s27, 4  ;;  %s799_s22 = int_to_ptr.vmem [resolvable:$false] %s798_s22 }
  0x63   : > { %s800_s28 = scalar_lea.vmem %s799_s22, 256  ;;  %p801_p12 = scmp.lt.s32.totalorder %s1126_s21, %s799_s22 }
  0x64   : > { %646 = vmatpush3.bf16.msra.mxu0 %v645_v12  ;;  %p796_p6 = pnand %p795_p4, %p1044_p10  ;;  %p802_p11 = scmp.lt.s32.totalorder %s800_s28, %s794_s25 }
  0x65   : > { %652 = vmatpush3.bf16.msra.mxu1 %v651_v13 }
  0x66   : > { %p797_p8 = pneg %p796_p6  ;;  %p803_p0 = por %p802_p11, %p801_p12 }
  0x67   : > { %628 = vmatmul.mubr.msk.f32.vlgmr.msra.gmra.mrb[0].mxu0 %vm270_vm1, %v258_v14 }
  0x68   : > { %639 = vmatmul.mubr.msk.f32.vlgmr.msra.gmra.mrb[0].mxu1 %vm270_vm1, %v258_v14  ;;  %p804_p5 = pnand %p803_p0, %p797_p8 }
 0x13a   : > { %v340_v17 = vpop.f32.mrb[0].mxu0 }
 0x13b   : > { %v341_v18 = vadd.f32 %v598_v15, %v340_v17  ;;  %v424_v19 = vpop.f32.mrb[0].mxu1  ;;  %v629_v20 = vpop.f32.mrb[1].mxu0 }
 0x13c   : > { %v425_v21 = vadd.f32 %v601_v16, %v424_v19  ;;  %v640_v22 = vpop.f32.mrb[1].mxu1 }
 0x13d   : > { %344 = vst [vmem:[%s250_s14] sm:$0xff] %v341_v18 }
 0x13e   : > { %428 = vst [vmem:[%s257_s12] sm:$0xff] %v425_v21 }
 0x13f   : > { %807 = shalt.err (!%p804_p5)
}
 0x140   : > { %s808_s23 = scalar_lea.hbm %s1124_s30, 128  ;;  %s812_s13 = scalar_lea.hbm %s1205_s3, 256 }
 0x141   : > { %p809_p9 = scmp.ne.s32.totalorder %s1124_s30, %s808_s23  ;;  %p813_p7 = scmp.lt.u32.totalorder %s1124_s30, %s1205_s3 }
 0x142   : > { %p814_p3 = scmp.lt.u32.totalorder %s812_s13, %s808_s23  ;;  %p816_p4 = scmp.lt.u32.totalorder %s808_s23, %s1124_s30 }
 0x143   : > { %p810_p1 = pnand %p809_p9, %p1044_p10 }
 0x144   : > { %p815_p13 = por %p814_p3, %p813_p7 }
 0x145   : > { %p811_p2 = pneg %p810_p1 }
 0x146   : > { %p817_p6 = por %p816_p4, %p815_p13 }
 0x148   : > { %p818_p8 = pnand %p817_p6, %p811_p2 }
 0x14a   : > { %821 = shalt.err (!%p818_p8)
}
 0x14b   : > { %659 = dma.vmem_to_hbm [thread:$0]  (%p1044_p10), %s1126_s21, 128, %s1124_s30, %s430_s7  }
 0x14c   : > { %s435_s9 = scalar_lea.sflag [#allocation9], %s1097_s6  ;;  %s822_s25 = scalar_lea.vmem %s1133_s29, 128 }
 0x14d   : > { %p823_p12 = scmp.ne.s32.totalorder %s1133_s29, %s822_s25  ;;  %s922_s27 = smov [#allocation8]  }
 0x14e   : > { %s826_s22 = sshll.u32 %s922_s27, 4  ;;  %s827_s22 = int_to_ptr.vmem [resolvable:$false] %s826_s22 }
 0x14f   : > { %p824_p11 = pnand %p823_p12, %p1044_p10  ;;  %s828_s28 = scalar_lea.vmem %s827_s22, 256 }
 0x150   : > { %p829_p5 = scmp.lt.s32.totalorder %s1133_s29, %s827_s22  ;;  %p830_p9 = scmp.lt.s32.totalorder %s828_s28, %s822_s25 }
 0x151   : > { %p825_p0 = pneg %p824_p11 }
 0x152   : > { %p831_p1 = por %p830_p9, %p829_p5 }
 0x154   : > { %p832_p2 = pnand %p831_p1, %p825_p0 }
 0x156   : > { %835 = shalt.err (!%p832_p2)
}
 0x157   : > { %s836_s6 = scalar_lea.hbm %s1131_s11, 128  ;;  %s840_s7 = scalar_lea.hbm %s1206_s4, 256 }
 0x158   : > { %p837_p7 = scmp.ne.s32.totalorder %s1131_s11, %s836_s6  ;;  %p841_p4 = scmp.lt.u32.totalorder %s1131_s11, %s1206_s4 }
 0x159   : > { %p842_p6 = scmp.lt.u32.totalorder %s840_s7, %s836_s6  ;;  %p844_p12 = scmp.lt.u32.totalorder %s836_s6, %s1131_s11 }
 0x15a   : > { %p838_p3 = pnand %p837_p7, %p1044_p10 }
 0x15b   : > { %p843_p8 = por %p842_p6, %p841_p4 }
 0x15c   : > { %p839_p13 = pneg %p838_p3 }
 0x15d   : > { %p845_p11 = por %p844_p12, %p843_p8 }
 0x15f   : > { %p846_p0 = pnand %p845_p11, %p839_p13 }
 0x161   : > { %849 = shalt.err (!%p846_p0)
}
 0x162   : > { %660 = dma.vmem_to_hbm [thread:$0]  (%p1044_p10), %s1133_s29, 128, %s1131_s11, %s435_s9  }
 0x163 PF: > { %s475_s12 = sand.u32 1, %s892_s15   ;;  %p1224_p5 = scmp.ne.s32.totalorder %s1214_s26, 0 }
 0x164   : > { %p1225_p9 = scmp.ge.s32.totalorder %s912_s20, 2  ;;  %s476_s13 = scalar_lea.sflag [#allocation4], %s475_s12 }
 0x166   : > { %p672_p1 = pnand %p1225_p9, %p1224_p5 }
 0x168   : > { %883 = dma.done.wait (!%p672_p1), %s476_s13, 128  }
 0x169   : > { %885 = vsyncadd (!%p672_p1), %s476_s13, 4294967168  ;;  %s485_s24 = scalar_lea.sflag [#allocation9], %s475_s12 }
 0x16a   : > { %887 = dma.done.wait (!%p672_p1), %s485_s24, 128  }
 0x16b   : > { %889 = vsyncadd (!%p672_p1), %s485_s24, 4294967168  ;;  %s25_s20 = sadd.s32 1, %s912_s20   ;;  %s1226_s15 = smov %s896_s16 }
 0x16c   : > { %p22_p2 = scmp.ge.s32.totalorder %s25_s20, 4   ;;  %s1227_s16 = smov %s900_s17 }
 0x16d   : > { %s1228_s17 = smov %s1053_s10  ;;  %s1229_s18 = smov %s908_s19 }
 0x16e   : > { %s1230_s19 = smov %s1232_s5  ;;  %24 = sbr.rel (!%p22_p2) target bundleno = 9 (0x9), region = 100 }
 0x175   :  { %490 = vsyncpa [#allocation3], 1 }
 0x176   :  { %492 = vsyncpa [#allocation3 + $0x1], 1 }
 0x177   :  { %493 = vsyncpa [#allocation6], 1 }
 0x178   :  { %494 = vsyncpa [#allocation4], 1 }
 0x179   :  { %496 = vsyncpa [#allocation4 + $0x1], 1 }
 0x17a   :  { %497 = vsyncpa [#allocation9], 1 }
 0x17b   :  { %499 = vsyncpa [#allocation9 + $0x1], 1 }

</bundles_post_ra>
